<compile_context>
chip_gen: v5e
topology: v5e:2x2
jax: 0.10.0
libtpu: 0.0.40
codegen_flags: <defaults>
</compile_context>

<pallas_src>
import math
import functools

import jax
import jax.numpy as jnp
from jax import lax
from jax.experimental import pallas as pl
from jax.experimental.pallas import tpu as pltpu

EMBED = 32
HEADS = 4
HIDDEN = 128
B = 2
S_AGENTS = 4   # n_query   (agents)
S_CITIES = 8   # graph_size (cities)
LANES = 4 * EMBED  # 128


# ----------------------------------------------------------------------------
# Row-block layout of the single packed weight/constant slab (all offsets are
# multiples of 8, lane width 128).
# ----------------------------------------------------------------------------
def _slab_offsets(E, HID, H, nq):
    off = {}
    r = 0
    off["wqkvm"] = r; r += E          # (E, 4E)  [Wq.T/sqrt(Dh) | Wk.T | Wv.T | M_T]
    off["w1"] = r; r += E             # (E, HID) FFN first layer (transposed)
    off["w2"] = r; r += HID           # (HID, E) FFN second layer (transposed, lane-padded)
    off["wout"] = r; r += E           # (E, E)   MHA out-proj (transposed, lane-padded)
    off["hmask"] = r; r += H * nq     # (H*nq, E)  0/1 per-head column mask
    off["smask"] = r; r += H * nq     # (H*nq, nk) additive cross-batch mask (0 / -1e30)
    off["vec"] = r; r += 8            # (8, 128)   packed bias / BN-affine rows
    off["umask"] = r; r += nq         # (nq, nk)   additive cross-batch mask for SAO
    off["lidx"] = r; r += nq          # (nq, nk)   local agent index (float)
    off["total"] = r
    return off


# ----------------------------------------------------------------------------
# Fused kernel: MHA(+residual) -> BN -> FFN(+residual) -> BN -> SAO -> argmax
# ----------------------------------------------------------------------------
def _decoder_kernel(x_ref, w_ref, o_ref, *, batch, s_agents, s_cities, num_heads,
                    hidden):
    Bn, Sa, Sc, H, HID = batch, s_agents, s_cities, num_heads, hidden
    E = x_ref.shape[-1]
    nq = Bn * Sa          # flattened agent rows
    nk = Bn * Sc          # flattened city rows
    off = _slab_offsets(E, HID, H, nq)
    eps = 1e-5
    f32 = jnp.float32
    V = off["vec"]

    x = x_ref[...]                    # (nq+nk, E): agents rows then cities rows
    q = x[0:nq]                       # (nq, E) agents (residual input)

    # ---- fused 128-lane projection: [Q | K | V | cities@M_T] -----------------
    proj = (jnp.dot(x, w_ref[off["wqkvm"]:off["wqkvm"] + E, :],
                    preferred_element_type=f32)
            + w_ref[V:V + 1, :])                                        # (nq+nk, 4E)
    Qp = proj[0:nq, 0:E]                  # 1/sqrt(head_dim) already folded in
    Kp = proj[nq:nq + nk, E:2 * E]
    Vp = proj[nq:nq + nk, 2 * E:3 * E]
    kvM = proj[nq:nq + nk, 3 * E:4 * E]   # (nk, E) = cities @ (w_key @ (w_query/sqrtE).T)

    # ---- multi-head attention, all heads & batches in one 2-D slab -----------
    head_mask = w_ref[off["hmask"]:off["hmask"] + H * nq, 0:E]          # (H*nq, E)
    q_big = jnp.concatenate([Qp] * H, axis=0) * head_mask               # (H*nq, E)
    s = lax.dot_general(q_big, Kp, (((1,), (1,)), ((), ())),
                        preferred_element_type=f32)                     # (H*nq, nk)
    s = s + w_ref[off["smask"]:off["smask"] + H * nq, 0:nk]             # mask x-batch

    m = jnp.max(s, axis=-1, keepdims=True)
    e = jnp.exp(s - m)                                 # masked entries underflow to 0
    p = e * pl.reciprocal(jnp.sum(e, axis=-1, keepdims=True), approx=False)

    o_big = jnp.dot(p, Vp, preferred_element_type=f32) * head_mask      # (H*nq, E)
    att = o_big[0:nq]
    for h in range(1, H):                              # aligned 8-row block adds
        att = att + o_big[h * nq:(h + 1) * nq]         # (nq, E) = concat over heads

    # ---- out projection + residual -------------------------------------------
    hidden1 = (jnp.dot(att, w_ref[off["wout"]:off["wout"] + E, 0:E],
                       preferred_element_type=f32)
               + w_ref[V + 2:V + 3, 0:E] + q)                           # (nq, E)

    # ---- BatchNorm1d over flattened rows (training stats, biased variance) ---
    mean1 = jnp.mean(hidden1, axis=0, keepdims=True)
    d1 = hidden1 - mean1
    var1 = jnp.mean(d1 * d1, axis=0, keepdims=True)
    xn = (d1 * lax.rsqrt(var1 + eps) * w_ref[V + 3:V + 4, 0:E]
          + w_ref[V + 4:V + 5, 0:E])

    # ---- FFN + residual + BatchNorm1d -----------------------------------------
    h1 = jnp.maximum(
        jnp.dot(xn, w_ref[off["w1"]:off["w1"] + E, :], preferred_element_type=f32)
        + w_ref[V + 1:V + 2, :], 0.0)                                   # (nq, HID)
    y = (jnp.dot(h1, w_ref[off["w2"]:off["w2"] + HID, 0:E],
                 preferred_element_type=f32)
         + w_ref[V + 7:V + 8, 0:E] + xn)
    mean2 = jnp.mean(y, axis=0, keepdims=True)
    d2 = y - mean2
    var2 = jnp.mean(d2 * d2, axis=0, keepdims=True)
    h_c = (d2 * lax.rsqrt(var2 + eps) * w_ref[V + 5:V + 6, 0:E]
           + w_ref[V + 6:V + 7, 0:E])                                   # (nq, E)

    # ---- SingleHeadAttention (bilinear form folded) + tanh clip + argmax -----
    # TODO(synk): attn_mask path (U[mask < 1e-8] = -1e8) not implemented; only the
    # default mask=None forward is reproduced.
    u = lax.dot_general(h_c, kvM, (((1,), (1,)), ((), ())),
                        preferred_element_type=f32)                     # (nq, nk)
    u = 10.0 * jnp.tanh(u)
    u = u + w_ref[off["umask"]:off["umask"] + nq, 0:nk]                 # drop x-batch

    # per-column first-max argmax over the agents of the matching batch
    maxv = jnp.max(u, axis=0, keepdims=True)                            # (1, nk)
    lidx = w_ref[off["lidx"]:off["lidx"] + nq, 0:nk]                    # (nq, nk)
    idx = jnp.min(jnp.where(u == maxv, lidx, float(Sa)), axis=0, keepdims=True)
    o_ref[...] = idx.astype(jnp.int32)                                  # (1, nk)


# ----------------------------------------------------------------------------
# Parameters: deterministic init (matching the original layout) + one-time packing.
# ----------------------------------------------------------------------------
def init_params(key):
    ks = jax.random.split(key, 8)
    E, HID = EMBED, HIDDEN

    def u(k, shape, bound):
        return jax.random.uniform(k, shape, jnp.float32, -bound, bound)

    p = {}
    # CA1 MultiheadAttention (packed in_proj like PyTorch)
    p["in_proj_w"] = u(ks[0], (3 * E, E), 1.0 / math.sqrt(E))
    p["in_proj_b"] = jnp.zeros((3 * E,), jnp.float32)
    p["out_w"] = u(ks[1], (E, E), 1.0 / math.sqrt(E))
    p["out_b"] = jnp.zeros((E,), jnp.float32)
    # BatchNorm affine (PyTorch default init)
    p["bn1_g"] = jnp.ones((E,), jnp.float32)
    p["bn1_b"] = jnp.zeros((E,), jnp.float32)
    p["bn2_g"] = jnp.ones((E,), jnp.float32)
    p["bn2_b"] = jnp.zeros((E,), jnp.float32)
    # FFN
    p["ffn_w1"] = u(ks[2], (HID, E), 1.0 / math.sqrt(E))
    p["ffn_b1"] = u(ks[3], (HID,), 1.0 / math.sqrt(E))
    p["ffn_w2"] = u(ks[4], (E, HID), 1.0 / math.sqrt(HID))
    p["ffn_b2"] = u(ks[5], (E,), 1.0 / math.sqrt(HID))
    # SingleHeadAttention (SAO): torch stores (in_dim, key_dim), used without transpose
    p["sao_wq"] = u(ks[6], (E, E), 1.0 / math.sqrt(E))
    p["sao_wk"] = u(ks[7], (E, E), 1.0 / math.sqrt(E))
    return p
    # NOTE: SingleDecoder also constructs CA2, but it is unused in forward().


def _pad_lanes(a, width):
    return jnp.pad(a, ((0, 0), (0, width - a.shape[-1])))


def _pad_vec(v, width):
    return jnp.pad(v, (0, width - v.shape[0]))


def prepare_params(p):
    """One-time packing of every weight/bias/mask into a single (R, 128) f32 slab."""
    E, HID, H = EMBED, HIDDEN, HEADS
    Bn, Sa, Sc = B, S_AGENTS, S_CITIES
    Dh = E // H
    nq, nk = Bn * Sa, Bn * Sc
    off = _slab_offsets(E, HID, H, nq)

    wq, wk, wv = jnp.split(p["in_proj_w"], 3, axis=0)
    bq, bk, bv = jnp.split(p["in_proj_b"], 3, axis=0)
    mha_scale = 1.0 / math.sqrt(Dh)          # folded into the query projection
    sao_scale = 1.0 / math.sqrt(E)           # folded into the SAO bilinear form

    # SAO bilinear fold: u = h_c @ (cities @ m_t).T  with  m_t = Wk @ (Wq*scale).T
    m_t = p["sao_wk"] @ (p["sao_wq"] * sao_scale).T                       # (E, E)
    w_qkvm = jnp.concatenate([wq.T * mha_scale, wk.T, wv.T, m_t], axis=1)  # (E, 4E)

    w1t = p["ffn_w1"].T                                                    # (E, HID)
    w2t = _pad_lanes(p["ffn_w2"].T, LANES)                                 # (HID, 128)
    woutt = _pad_lanes(p["out_w"].T, LANES)                                # (E, 128)

    # constant masks / index table (replace in-kernel iota/compare/select chains)
    row_h = jnp.arange(H * nq)[:, None]
    col_e = jnp.arange(E)[None, :]
    col_k = jnp.arange(nk)[None, :]
    row_q = jnp.arange(nq)[:, None]
    head_mask = ((row_h // nq) == (col_e // Dh)).astype(jnp.float32)       # (H*nq, E)
    s_mask = jnp.where(((row_h % nq) // Sa) == (col_k // Sc), 0.0, -1e30)  # (H*nq, nk)
    u_mask = jnp.where((row_q // Sa) == (col_k // Sc), 0.0, -1e30)         # (nq, nk)
    local_idx = jnp.broadcast_to((row_q % Sa).astype(jnp.float32), (nq, nk))

    b_qkvm = jnp.concatenate([bq * mha_scale, bk, bv, jnp.zeros((E,), jnp.float32)])
    vec = jnp.stack([
        b_qkvm,                          # 0: fused projection bias (128 lanes)
        p["ffn_b1"],                     # 1: FFN bias 1 (128 lanes)
        _pad_vec(p["out_b"], LANES),     # 2
        _pad_vec(p["bn1_g"], LANES),     # 3
        _pad_vec(p["bn1_b"], LANES),     # 4
        _pad_vec(p["bn2_g"], LANES),     # 5
        _pad_vec(p["bn2_b"], LANES),     # 6
        _pad_vec(p["ffn_b2"], LANES),    # 7
    ], axis=0)                           # (8, 128)

    slab = jnp.concatenate([
        w_qkvm,
        w1t,
        w2t,
        woutt,
        _pad_lanes(head_mask, LANES),
        _pad_lanes(s_mask, LANES),
        vec,
        _pad_lanes(u_mask, LANES),
        _pad_lanes(local_idx, LANES),
    ], axis=0).astype(jnp.float32)
    assert slab.shape == (off["total"], LANES)
    return slab


# ----------------------------------------------------------------------------
# Wrappers: instance grid (weights stay VMEM-resident, one DMA), N=1 for the
# plain single forward.
# ----------------------------------------------------------------------------
@jax.jit
def single_decoder_forward_batched(agents, cities, w_slab):
    """agents: (N, B, Sa, E), cities: (N, B, Sc, E) -> (N, B, Sc) int32 indices."""
    N, Bn, Sa, E = agents.shape
    Sc = cities.shape[2]
    nq, nk = Bn * Sa, Bn * Sc
    x = jnp.concatenate([agents.reshape(N, nq, E), cities.reshape(N, nk, E)], axis=1)

    kernel = functools.partial(_decoder_kernel, batch=Bn, s_agents=Sa, s_cities=Sc,
                               num_heads=HEADS, hidden=HIDDEN)
    out = pl.pallas_call(
        kernel,
        # torch argmax returns int64; int32 used here (indices are tiny).
        out_shape=jax.ShapeDtypeStruct((N, 1, nk), jnp.int32),
        grid=(N,),
        in_specs=[
            pl.BlockSpec((None, nq + nk, E), lambda i: (i, 0, 0)),   # per-instance
            pl.BlockSpec(w_slab.shape, lambda i: (0, 0)),            # resident weights
        ],
        out_specs=pl.BlockSpec((None, 1, nk), lambda i: (i, 0, 0)),
        compiler_params=pltpu.CompilerParams(dimension_semantics=("parallel",)),
    )(x, w_slab)
    return out.reshape(N, Bn, Sc)


@jax.jit
def single_decoder_forward(agents, cities, w_slab):
    """agents: (B, Sa, E), cities: (B, Sc, E) -> (B, Sc) int32 indices."""
    return single_decoder_forward_batched(agents[None], cities[None], w_slab)[0]


if __name__ == "__main__":
    key = jax.random.PRNGKey(0)
    k_a, k_c, k_p = jax.random.split(key, 3)
    agents_embeddings = jax.random.normal(k_a, (B, S_AGENTS, EMBED), jnp.float32)
    cities_embeddings = jax.random.normal(k_c, (B, S_CITIES, EMBED), jnp.float32)
    params = init_params(k_p)
    w_slab = prepare_params(params)

    # Single forward (matches SingleDecoder.forward semantics).
    next_idx = single_decoder_forward(agents_embeddings, cities_embeddings, w_slab)
    jax.block_until_ready(next_idx)
    assert next_idx.shape == (B, S_CITIES)

    # Batched-instance path: grid over N instances amortizes launch/DMA overhead;
    # instance 0 uses the same inputs and must reproduce the single-call result.
    N = 4
    k_an, k_cn = jax.random.split(jax.random.PRNGKey(1), 2)
    agents_n = jax.random.normal(k_an, (N, B, S_AGENTS, EMBED), jnp.float32)
    cities_n = jax.random.normal(k_cn, (N, B, S_CITIES, EMBED), jnp.float32)
    agents_n = agents_n.at[0].set(agents_embeddings)
    cities_n = cities_n.at[0].set(cities_embeddings)
    out_n = single_decoder_forward_batched(agents_n, cities_n, w_slab)
    jax.block_until_ready(out_n)
    assert out_n.shape == (N, B, S_CITIES)
    assert bool(jnp.all(out_n[0] == next_idx))

    print("KERNEL_OK")
</pallas_src>

<mosaic_0001>
module attributes {stable_mosaic.version = 11 : i64} {
  func.func @_decoder_kernel(%arg0: i32, %arg1: memref<1x24x32xf32, #tpu.memory_space<vmem>>, %arg2: memref<312x128xf32, #tpu.memory_space<vmem>>, %arg3: memref<1x1x16xi32, #tpu.memory_space<vmem>>) attributes {dimension_semantics = [#tpu.dimension_semantics<parallel>], iteration_bounds = array<i64: 1>, scalar_prefetch = 0 : i64, scratch_operands = 0 : i64, tpu.core_type = #tpu.core_type<tc>, window_params = [{transform_indices = @transform_0, window_bounds = array<i64: 1, 24, 32>}, {pipeline_mode = #tpu.pipeline_mode<synchronous>, transform_indices = @transform_1, window_bounds = array<i64: 312, 128>}, {transform_indices = @transform_2, window_bounds = array<i64: 1, 1, 16>}]} {
    %c0 = arith.constant 0 : index
    %c0_0 = arith.constant 0 : index
    %c0_1 = arith.constant 0 : index
    %0 = vector.load %arg1[%c0, %c0_0, %c0_1] : memref<1x24x32xf32, #tpu.memory_space<vmem>>, vector<1x24x32xf32>
    %1 = vector.shape_cast %0 : vector<1x24x32xf32> to vector<24x32xf32>
    %2 = vector.extract_strided_slice %1 {offsets = [0, 0], sizes = [8, 32], strides = [1, 1]} : vector<24x32xf32> to vector<8x32xf32>
    %c0_2 = arith.constant 0 : index
    %c0_3 = arith.constant 0 : index
    %3 = vector.load %arg2[%c0_2, %c0_3] : memref<312x128xf32, #tpu.memory_space<vmem>>, vector<32x128xf32>
    %cst = arith.constant dense<0.000000e+00> : vector<24x128xf32>
    %4 = tpu.matmul %1, %3, %cst {dimension_numbers = #tpu.dot_dimension_numbers<[1], [0], [0], [1], [0, 0, 1, 1], [], []>} : vector<24x32xf32>, vector<32x128xf32>, vector<24x128xf32> -> vector<24x128xf32>
    %c288 = arith.constant 288 : index
    %c0_4 = arith.constant 0 : index
    %5 = vector.load %arg2[%c288, %c0_4] : memref<312x128xf32, #tpu.memory_space<vmem>>, vector<1x128xf32>
    %6 = vector.broadcast %5 : vector<1x128xf32> to vector<24x128xf32>
    %7 = arith.addf %4, %6 : vector<24x128xf32>
    %8 = vector.extract_strided_slice %7 {offsets = [0, 0], sizes = [8, 32], strides = [1, 1]} : vector<24x128xf32> to vector<8x32xf32>
    %9 = vector.extract_strided_slice %7 {offsets = [8, 32], sizes = [16, 32], strides = [1, 1]} : vector<24x128xf32> to vector<16x32xf32>
    %10 = vector.extract_strided_slice %7 {offsets = [8, 64], sizes = [16, 32], strides = [1, 1]} : vector<24x128xf32> to vector<16x32xf32>
    %11 = vector.extract_strided_slice %7 {offsets = [8, 96], sizes = [16, 32], strides = [1, 1]} : vector<24x128xf32> to vector<16x32xf32>
    %c224 = arith.constant 224 : index
    %c0_5 = arith.constant 0 : index
    %12 = vector.load %arg2[%c224, %c0_5] : memref<312x128xf32, #tpu.memory_space<vmem>>, vector<32x32xf32>
    %13 = tpu.concatenate %8, %8, %8, %8 in 0 : vector<8x32xf32>, vector<8x32xf32>, vector<8x32xf32>, vector<8x32xf32> -> vector<32x32xf32>
    %14 = arith.mulf %13, %12 : vector<32x32xf32>
    %cst_6 = arith.constant dense<0.000000e+00> : vector<32x16xf32>
    %15 = tpu.matmul %14, %9, %cst_6 {dimension_numbers = #tpu.dot_dimension_numbers<[1], [1], [0], [0], [0, 0, 1, 0], [], []>} : vector<32x32xf32>, vector<16x32xf32>, vector<32x16xf32> -> vector<32x16xf32>
    %c256 = arith.constant 256 : index
    %c0_7 = arith.constant 0 : index
    %16 = vector.load %arg2[%c256, %c0_7] : memref<312x128xf32, #tpu.memory_space<vmem>>, vector<32x16xf32>
    %17 = arith.addf %15, %16 : vector<32x16xf32>
    %cst_8 = arith.constant dense<0xFF800000> : vector<32xf32>
    %18 = vector.multi_reduction <maximumf>, %17, %cst_8 [1] : vector<32x16xf32> to vector<32xf32>
    %19 = vector.shape_cast %18 : vector<32xf32> to vector<32x1xf32>
    %20 = vector.broadcast %19 : vector<32x1xf32> to vector<32x16xf32>
    %21 = arith.subf %17, %20 : vector<32x16xf32>
    %22 = math.exp %21 : vector<32x16xf32>
    %cst_9 = arith.constant dense<0.000000e+00> : vector<32xf32>
    %23 = vector.multi_reduction <add>, %22, %cst_9 [1] : vector<32x16xf32> to vector<32xf32>
    %24 = vector.shape_cast %23 : vector<32xf32> to vector<32x1xf32>
    %25 = tpu.reciprocal %24 : vector<32x1xf32> -> vector<32x1xf32>
    %26 = vector.broadcast %25 : vector<32x1xf32> to vector<32x16xf32>
    %27 = arith.mulf %22, %26 : vector<32x16xf32>
    %cst_10 = arith.constant dense<0.000000e+00> : vector<32x32xf32>
    %28 = tpu.matmul %27, %10, %cst_10 {dimension_numbers = #tpu.dot_dimension_numbers<[1], [0], [0], [1], [0, 0, 1, 1], [], []>} : vector<32x16xf32>, vector<16x32xf32>, vector<32x32xf32> -> vector<32x32xf32>
    %29 = arith.mulf %28, %12 : vector<32x32xf32>
    %30 = vector.extract_strided_slice %29 {offsets = [0, 0], sizes = [8, 32], strides = [1, 1]} : vector<32x32xf32> to vector<8x32xf32>
    %31 = vector.extract_strided_slice %29 {offsets = [8, 0], sizes = [8, 32], strides = [1, 1]} : vector<32x32xf32> to vector<8x32xf32>
    %32 = arith.addf %30, %31 : vector<8x32xf32>
    %33 = vector.extract_strided_slice %29 {offsets = [16, 0], sizes = [8, 32], strides = [1, 1]} : vector<32x32xf32> to vector<8x32xf32>
    %34 = arith.addf %32, %33 : vector<8x32xf32>
    %35 = vector.extract_strided_slice %29 {offsets = [24, 0], sizes = [8, 32], strides = [1, 1]} : vector<32x32xf32> to vector<8x32xf32>
    %36 = arith.addf %34, %35 : vector<8x32xf32>
    %c192 = arith.constant 192 : index
    %c0_11 = arith.constant 0 : index
    %37 = vector.load %arg2[%c192, %c0_11] : memref<312x128xf32, #tpu.memory_space<vmem>>, vector<32x32xf32>
    %cst_12 = arith.constant dense<0.000000e+00> : vector<8x32xf32>
    %38 = tpu.matmul %36, %37, %cst_12 {dimension_numbers = #tpu.dot_dimension_numbers<[1], [0], [0], [1], [0, 0, 1, 1], [], []>} : vector<8x32xf32>, vector<32x32xf32>, vector<8x32xf32> -> vector<8x32xf32>
    %c290 = arith.constant 290 : index
    %c0_13 = arith.constant 0 : index
    %39 = vector.load %arg2[%c290, %c0_13] : memref<312x128xf32, #tpu.memory_space<vmem>>, vector<1x32xf32>
    %40 = vector.broadcast %39 : vector<1x32xf32> to vector<8x32xf32>
    %41 = arith.addf %38, %40 : vector<8x32xf32>
    %42 = arith.addf %41, %2 : vector<8x32xf32>
    %cst_14 = arith.constant dense<0.000000e+00> : vector<32xf32>
    %43 = vector.multi_reduction <add>, %42, %cst_14 [0] : vector<8x32xf32> to vector<32xf32>
    %44 = vector.shape_cast %43 : vector<32xf32> to vector<1x32xf32>
    %cst_15 = arith.constant 8.000000e+00 : f32
    %45 = vector.broadcast %cst_15 : f32 to vector<1x32xf32>
    %46 = arith.divf %44, %45 : vector<1x32xf32>
    %47 = vector.broadcast %46 : vector<1x32xf32> to vector<8x32xf32>
    %48 = arith.subf %42, %47 : vector<8x32xf32>
    %49 = arith.mulf %48, %48 : vector<8x32xf32>
    %cst_16 = arith.constant dense<0.000000e+00> : vector<32xf32>
    %50 = vector.multi_reduction <add>, %49, %cst_16 [0] : vector<8x32xf32> to vector<32xf32>
    %51 = vector.shape_cast %50 : vector<32xf32> to vector<1x32xf32>
    %cst_17 = arith.constant 8.000000e+00 : f32
    %52 = vector.broadcast %cst_17 : f32 to vector<1x32xf32>
    %53 = arith.divf %51, %52 : vector<1x32xf32>
    %cst_18 = arith.constant 9.99999974E-6 : f32
    %54 = vector.broadcast %cst_18 : f32 to vector<1x32xf32>
    %55 = arith.addf %53, %54 : vector<1x32xf32>
    %56 = math.rsqrt %55 : vector<1x32xf32>
    %57 = vector.broadcast %56 : vector<1x32xf32> to vector<8x32xf32>
    %58 = arith.mulf %48, %57 : vector<8x32xf32>
    %c291 = arith.constant 291 : index
    %c0_19 = arith.constant 0 : index
    %59 = vector.load %arg2[%c291, %c0_19] : memref<312x128xf32, #tpu.memory_space<vmem>>, vector<1x32xf32>
    %60 = vector.broadcast %59 : vector<1x32xf32> to vector<8x32xf32>
    %61 = arith.mulf %58, %60 : vector<8x32xf32>
    %c292 = arith.constant 292 : index
    %c0_20 = arith.constant 0 : index
    %62 = vector.load %arg2[%c292, %c0_20] : memref<312x128xf32, #tpu.memory_space<vmem>>, vector<1x32xf32>
    %63 = vector.broadcast %62 : vector<1x32xf32> to vector<8x32xf32>
    %64 = arith.addf %61, %63 : vector<8x32xf32>
    %c32 = arith.constant 32 : index
    %c0_21 = arith.constant 0 : index
    %65 = vector.load %arg2[%c32, %c0_21] : memref<312x128xf32, #tpu.memory_space<vmem>>, vector<32x128xf32>
    %cst_22 = arith.constant dense<0.000000e+00> : vector<8x128xf32>
    %66 = tpu.matmul %64, %65, %cst_22 {dimension_numbers = #tpu.dot_dimension_numbers<[1], [0], [0], [1], [0, 0, 1, 1], [], []>} : vector<8x32xf32>, vector<32x128xf32>, vector<8x128xf32> -> vector<8x128xf32>
    %c289 = arith.constant 289 : index
    %c0_23 = arith.constant 0 : index
    %67 = vector.load %arg2[%c289, %c0_23] : memref<312x128xf32, #tpu.memory_space<vmem>>, vector<1x128xf32>
    %68 = vector.broadcast %67 : vector<1x128xf32> to vector<8x128xf32>
    %69 = arith.addf %66, %68 : vector<8x128xf32>
    %cst_24 = arith.constant 0.000000e+00 : f32
    %70 = vector.broadcast %cst_24 : f32 to vector<8x128xf32>
    %71 = arith.maximumf %69, %70 : vector<8x128xf32>
    %c64 = arith.constant 64 : index
    %c0_25 = arith.constant 0 : index
    %72 = vector.load %arg2[%c64, %c0_25] : memref<312x128xf32, #tpu.memory_space<vmem>>, vector<128x32xf32>
    %cst_26 = arith.constant dense<0.000000e+00> : vector<8x32xf32>
    %73 = tpu.matmul %71, %72, %cst_26 {dimension_numbers = #tpu.dot_dimension_numbers<[1], [0], [0], [1], [0, 0, 1, 1], [], []>} : vector<8x128xf32>, vector<128x32xf32>, vector<8x32xf32> -> vector<8x32xf32>
    %c295 = arith.constant 295 : index
    %c0_27 = arith.constant 0 : index
    %74 = vector.load %arg2[%c295, %c0_27] : memref<312x128xf32, #tpu.memory_space<vmem>>, vector<1x32xf32>
    %75 = vector.broadcast %74 : vector<1x32xf32> to vector<8x32xf32>
    %76 = arith.addf %73, %75 : vector<8x32xf32>
    %77 = arith.addf %76, %64 : vector<8x32xf32>
    %cst_28 = arith.constant dense<0.000000e+00> : vector<32xf32>
    %78 = vector.multi_reduction <add>, %77, %cst_28 [0] : vector<8x32xf32> to vector<32xf32>
    %79 = vector.shape_cast %78 : vector<32xf32> to vector<1x32xf32>
    %cst_29 = arith.constant 8.000000e+00 : f32
    %80 = vector.broadcast %cst_29 : f32 to vector<1x32xf32>
    %81 = arith.divf %79, %80 : vector<1x32xf32>
    %82 = vector.broadcast %81 : vector<1x32xf32> to vector<8x32xf32>
    %83 = arith.subf %77, %82 : vector<8x32xf32>
    %84 = arith.mulf %83, %83 : vector<8x32xf32>
    %cst_30 = arith.constant dense<0.000000e+00> : vector<32xf32>
    %85 = vector.multi_reduction <add>, %84, %cst_30 [0] : vector<8x32xf32> to vector<32xf32>
    %86 = vector.shape_cast %85 : vector<32xf32> to vector<1x32xf32>
    %cst_31 = arith.constant 8.000000e+00 : f32
    %87 = vector.broadcast %cst_31 : f32 to vector<1x32xf32>
    %88 = arith.divf %86, %87 : vector<1x32xf32>
    %cst_32 = arith.constant 9.99999974E-6 : f32
    %89 = vector.broadcast %cst_32 : f32 to vector<1x32xf32>
    %90 = arith.addf %88, %89 : vector<1x32xf32>
    %91 = math.rsqrt %90 : vector<1x32xf32>
    %92 = vector.broadcast %91 : vector<1x32xf32> to vector<8x32xf32>
    %93 = arith.mulf %83, %92 : vector<8x32xf32>
    %c293 = arith.constant 293 : index
    %c0_33 = arith.constant 0 : index
    %94 = vector.load %arg2[%c293, %c0_33] : memref<312x128xf32, #tpu.memory_space<vmem>>, vector<1x32xf32>
    %95 = vector.broadcast %94 : vector<1x32xf32> to vector<8x32xf32>
    %96 = arith.mulf %93, %95 : vector<8x32xf32>
    %c294 = arith.constant 294 : index
    %c0_34 = arith.constant 0 : index
    %97 = vector.load %arg2[%c294, %c0_34] : memref<312x128xf32, #tpu.memory_space<vmem>>, vector<1x32xf32>
    %98 = vector.broadcast %97 : vector<1x32xf32> to vector<8x32xf32>
    %99 = arith.addf %96, %98 : vector<8x32xf32>
    %cst_35 = arith.constant dense<0.000000e+00> : vector<8x16xf32>
    %100 = tpu.matmul %99, %11, %cst_35 {dimension_numbers = #tpu.dot_dimension_numbers<[1], [1], [0], [0], [0, 0, 1, 0], [], []>} : vector<8x32xf32>, vector<16x32xf32>, vector<8x16xf32> -> vector<8x16xf32>
    %101 = math.tanh %100 : vector<8x16xf32>
    %cst_36 = arith.constant 1.000000e+01 : f32
    %102 = vector.broadcast %cst_36 : f32 to vector<8x16xf32>
    %103 = arith.mulf %102, %101 : vector<8x16xf32>
    %c296 = arith.constant 296 : index
    %c0_37 = arith.constant 0 : index
    %104 = vector.load %arg2[%c296, %c0_37] : memref<312x128xf32, #tpu.memory_space<vmem>>, vector<8x16xf32>
    %105 = arith.addf %103, %104 : vector<8x16xf32>
    %cst_38 = arith.constant dense<0xFF800000> : vector<16xf32>
    %106 = vector.multi_reduction <maximumf>, %105, %cst_38 [0] : vector<8x16xf32> to vector<16xf32>
    %107 = vector.shape_cast %106 : vector<16xf32> to vector<1x16xf32>
    %c304 = arith.constant 304 : index
    %c0_39 = arith.constant 0 : index
    %108 = vector.load %arg2[%c304, %c0_39] : memref<312x128xf32, #tpu.memory_space<vmem>>, vector<8x16xf32>
    %109 = vector.broadcast %107 : vector<1x16xf32> to vector<8x16xf32>
    %110 = arith.cmpf oeq, %105, %109 : vector<8x16xf32>
    %cst_40 = arith.constant 4.000000e+00 : f32
    %111 = vector.broadcast %cst_40 : f32 to vector<8x16xf32>
    %112 = arith.select %110, %108, %111 : vector<8x16xi1>, vector<8x16xf32>
    %cst_41 = arith.constant dense<0x7F800000> : vector<16xf32>
    %113 = vector.multi_reduction <minimumf>, %112, %cst_41 [0] : vector<8x16xf32> to vector<16xf32>
    %114 = vector.shape_cast %113 : vector<16xf32> to vector<1x16xf32>
    %115 = arith.fptosi %114 : vector<1x16xf32> to vector<1x16xi32>
    %c0_42 = arith.constant 0 : index
    %c0_43 = arith.constant 0 : index
    %c0_44 = arith.constant 0 : index
    %116 = vector.load %arg3[%c0_42, %c0_43, %c0_44] : memref<1x1x16xi32, #tpu.memory_space<vmem>>, vector<1x1x16xi32>
    %117 = vector.shape_cast %116 : vector<1x1x16xi32> to vector<1x16xi32>
    %118 = vector.shape_cast %115 : vector<1x16xi32> to vector<1x1x16xi32>
    tpu.vector_store %arg3[%c0_42, %c0_43, %c0_44], %118 {strides = array<i32>} : memref<1x1x16xi32, #tpu.memory_space<vmem>>, vector<1x1x16xi32>,
    return
  }
  func.func @transform_0(%arg0: i32) -> (i32, i32, i32) {
    %c0_i32 = arith.constant 0 : i32
    %c0_i32_0 = arith.constant 0 : i32
    %c0_i32_1 = arith.constant 0 : i32
    return %arg0, %c0_i32, %c0_i32_0 : i32, i32, i32
  }
  func.func @transform_1(%arg0: i32) -> (i32, i32) {
    %c0_i32 = arith.constant 0 : i32
    %c0_i32_0 = arith.constant 0 : i32
    %c0_i32_1 = arith.constant 0 : i32
    return %c0_i32, %c0_i32_0 : i32, i32
  }
  func.func @transform_2(%arg0: i32) -> (i32, i32, i32) {
    %c0_i32 = arith.constant 0 : i32
    %c0_i32_0 = arith.constant 0 : i32
    %c0_i32_1 = arith.constant 0 : i32
    return %arg0, %c0_i32, %c0_i32_0 : i32, i32, i32
  }
}

</mosaic_0001>

<bundles_post_ra>
// kernel: single_decoder_forward_batched.1
= control target key start
LH: loop header
LB: loop body
LE: loop exit
PB: predicated region body
PF: predicated region fallthrough
CT: control target
= control target key end

     0   :  { %7 = vsyncpa [#allocation3], 0  ;;  %s617_s12 = smov [#allocation2]   ;;  %s618_s14 = smov 128   ;;  %s738_s0 = inlined_call_operand.vmem [shape: f32[1,24,32], index: 0, kind: input, shape index: {}]   ;;  %s739_s1 = inlined_call_operand.hbm [shape: f32[312,128], index: 1, kind: input, shape index: {}]   ;;  %s740_s2 = inlined_call_operand.vmem [shape: s32[1,1,16], index: 2, kind: output, shape index: {}]  }
   0x1   :  { %s14_s11 = sshll.u32 %s739_s1, 4  ;;  %s16_s13 = sshll.u32 %s617_s12, 4  ;;  %s15_s11 = int_to_ptr.hbm [resolvable:$true] %s14_s11  ;;  %s17_s13 = int_to_ptr.vmem [resolvable:$true] %s16_s13 }
   0x2   :  { %s619_s15 = smov 8  }
   0x3   :  { %22 = dma.hbm_to_vmem [thread:$0]  %s15_s11, 4992, %s17_s13, [#allocation3], %s618_s14, %s618_s14, %s619_s15  }
   0x4   :  { %615 = dma.done.wait [#allocation3], 4992  }
   0x5   :  { %616 = vsyncadd [#allocation3], 4294962304  ;;  %v33_v0 = vld [vmem:[#allocation2 + $0x18] sm:$0xff]  ;;  %v32_v1 = vld [vmem:[#allocation2 + $0x10] sm:$0xff]  ;;  %vm36_vm0 = vcmask 261120   ;;  %s620_s21 = smov 96  }
   0x6   :  { %58 = vmatpush.msra.mxu0 %v33_v0  ;;  %v31_v2 = vld [vmem:[#allocation2 + $0x8] sm:$0xff]  ;;  %v30_v3 = vld [vmem:[#allocation2] sm:$0xff]  ;;  %v29_v6 = vld [vmem:[%s738_s0 + $0x10] sm:$0xff]  ;;  %vm135_vm1 = vcmask 130048   ;;  %s622_s22 = smov 32  }
   0x7   :  { %v645_v4 = vld [vmem:[%s738_s0] sm:$0xff]  ;;  %v28_v5 = vld [vmem:[%s738_s0 + $0x8] sm:$0xff]  ;;  %v673_v20 = vld [vmem:[#allocation2 + $0xf0] sm:$0xff]  ;;  %s621_s0 = smov 64  }
   0x8   :  { %59 = vmatpush.msra.mxu0 %v32_v1  ;;  %v559_v7 = vld [vmem:[#allocation2 + $0x120] ss:$0 sm:$0xff]  ;;  %v669_v18 = vld [vmem:[#allocation2 + $0xe8] sm:$0xff]  ;;  %v677_v22 = vld [vmem:[#allocation2 + $0xf8] sm:$0xff] }
   0x9   :  { %v664_v15 = vld [vmem:[#allocation2 + $0xe0] sm:$0xff]  ;;  %v81_v28 = vld [vmem:[#allocation2 + $0x108] sm:$0xff]  ;;  %v82_v32 = vld [vmem:[#allocation2 + $0x110] sm:$0xff] }
   0xa   :  { %60 = vmatpush.msra.mxu0 %v31_v2  ;;  %v80_v24 = vld [vmem:[#allocation2 + $0x100] sm:$0xff]  ;;  %v83_v36 = vld [vmem:[#allocation2 + $0x118] sm:$0xff] }
   0xc   :  { %61 = vmatpush.msra.mxu0 %v30_v3 }
   0xd   :  { %524 = vmatmul.msk.f32.vlgmr.msra.gmra.mxu0 %vm36_vm0, %v645_v4 }
  0x15   :  { %525 = vmatmul.msk.f32.gmra.mxu0 %vm36_vm0, %v28_v5 }
  0x1d   :  { %526 = vmatmul.msk.f32.gmra.mxu0 %vm36_vm0, %v29_v6 }
  0x8a   :  { %v63_v8 = vpop.f32.mrf.mxu0 }
  0x8b   :  { %v64_v9 = vadd.f32 %v559_v7, %v63_v8 }
  0x8d   :  { %v76_v17 = vmul.f32 %v664_v15, %v64_v9  ;;  %v77_v19 = vmul.f32 %v669_v18, %v64_v9  ;;  %v78_v21 = vmul.f32 %v673_v20, %v64_v9  ;;  %v79_v23 = vmul.f32 %v677_v22, %v64_v9 }
  0x92   :  { %v66_v10 = vpop.f32.mrf.mxu0 }
  0x93   :  { %v660_v13 = vadd.f32 %v559_v7, %v66_v10 }
  0x9a   :  { %v69_v11 = vpop.f32.mrf.mxu0 }
  0x9b   :  { %v657_v12 = vadd.f32 %v559_v7, %v69_v11 }
  0x9d   :  { %88 = vrot.lane.b32.xlu0 %v657_v12, %s620_s21  ;;  %v554_v60 = vpack.i.bf16 %v660_v13, %v657_v12 }
  0xa5   :  { %86 = vrot.lane.b32.xlu0 %v660_v13, %s620_s21 }
 0x10f   :  { %v89_v14 = vpop.permute.xlu0 %88 }
 0x110   :  { %527 = vmatpush.xpose.msk.msra.mxu1 %vm36_vm0, %v89_v14 }
 0x117   :  { %v87_v16 = vpop.permute.xlu0 %86 }
 0x118   :  { %528 = vmatpush.xpose.msk.msra.mxu1 %vm36_vm0, %v87_v16 }
 0x11b   :  { %529 = vmatmul.msk.f32.vlgmr.msra.gmra.mxu1 %vm36_vm0, %v76_v17 }
 0x123   :  { %530 = vmatmul.msk.f32.gmra.mxu1 %vm36_vm0, %v77_v19 }
 0x12b   :  { %531 = vmatmul.msk.f32.gmra.mxu1 %vm36_vm0, %v78_v21 }
 0x133   :  { %532 = vmatmul.msk.f32.gmra.mxu1 %vm36_vm0, %v79_v23 }
 0x198   :  { %v123_v25 = vpop.f32.mrf.mxu1 }
 0x199   :  { %v124_v26 = vadd.f32 %v123_v25, %v80_v24 }
 0x19b   :  { %v136_v27 = vsel %vm135_vm1, %v124_v26, -inf }
 0x19c   :  { %137 = vmax.xlane.f32.xlu1 %v136_v27 }
 0x1a0   :  { %v126_v29 = vpop.f32.mrf.mxu1 }
 0x1a1   :  { %v127_v30 = vadd.f32 %v126_v29, %v81_v28 }
 0x1a3   :  { %v139_v31 = vsel %vm135_vm1, %v127_v30, -inf }
 0x1a4   :  { %140 = vmax.xlane.f32.xlu1 %v139_v31 }
 0x1a8   :  { %v129_v33 = vpop.f32.mrf.mxu1 }
 0x1a9   :  { %v130_v34 = vadd.f32 %v129_v33, %v82_v32 }
 0x1ab   :  { %v142_v35 = vsel %vm135_vm1, %v130_v34, -inf }
 0x1ac   :  { %143 = vmax.xlane.f32.xlu2 %v142_v35 }
 0x1b0   :  { %v132_v37 = vpop.f32.mrf.mxu1 }
 0x1b1   :  { %v133_v38 = vadd.f32 %v132_v37, %v83_v36 }
 0x1b3   :  { %v145_v39 = vsel %vm135_vm1, %v133_v38, -inf }
 0x1b4   :  { %146 = vmax.xlane.f32.xlu2 %v145_v39 }
 0x20f   :  { %v138_v40 = vpop.xlane.xlu1 %137 }
 0x210   :  { %v148_v41 = vsub.f32 %v124_v26, %v138_v40 }
 0x212   :  { %v152_v42 = vmul.f32 1.442695, %v148_v41 }
 0x214   :  { %567 = vpow2.f32 %v152_v42 }
 0x217   :  { %v141_v43 = vpop.xlane.xlu1 %140 }
 0x218   :  { %v149_v44 = vsub.f32 %v127_v30, %v141_v43 }
 0x21a   :  { %v685_v45 = vpop.eup %567  ;;  %v154_v46 = vmul.f32 1.442695, %v149_v44 }
 0x21b   :  { %v160_v47 = vsel %vm135_vm1, %v685_v45, 0.0 }
 0x21c   :  { %569 = vpow2.f32 %v154_v46  ;;  %161 = vadd.xlane.f32.xlu0 %v160_v47 }
 0x21f   :  { %v144_v48 = vpop.xlane.xlu2 %143 }
 0x220   :  { %v150_v49 = vsub.f32 %v130_v34, %v144_v48 }
 0x222   :  { %v689_v50 = vpop.eup %569  ;;  %v156_v51 = vmul.f32 1.442695, %v150_v49 }
 0x223   :  { %v163_v52 = vsel %vm135_vm1, %v689_v50, 0.0 }
 0x224   :  { %571 = vpow2.f32 %v156_v51  ;;  %164 = vadd.xlane.f32.xlu1 %v163_v52 }
 0x227   :  { %v147_v53 = vpop.xlane.xlu2 %146 }
 0x228   :  { %v151_v54 = vsub.f32 %v133_v38, %v147_v53  ;;  %v289_v53 = vld [vmem:[#allocation2 + $0xd8] sm:$0xff] }
 0x229   :  { %307 = vmatpush.msra.mxu3 %v289_v53  ;;  %v394_v53 = vld [vmem:[#allocation2 + $0x68] sm:$0xff] }
 0x22a   :  { %v693_v55 = vpop.eup %571  ;;  %v158_v56 = vmul.f32 1.442695, %v151_v54  ;;  %v288_v54 = vld [vmem:[#allocation2 + $0xd0] sm:$0xff] }
 0x22b   :  { %v166_v57 = vsel %vm135_vm1, %v693_v55, 0.0  ;;  %308 = vmatpush.msra.mxu3 %v288_v54 }
 0x22c   :  { %573 = vpow2.f32 %v158_v56  ;;  %167 = vadd.xlane.f32.xlu2 %v166_v57  ;;  %v287_v56 = vld [vmem:[#allocation2 + $0xc8] sm:$0xff]  ;;  %v286_v57 = vld [vmem:[#allocation2 + $0xc0] sm:$0xff] }
 0x22d   :  { %309 = vmatpush.msra.mxu3 %v287_v56  ;;  %v393_v56 = vld [vmem:[#allocation2 + $0x60] sm:$0xff] }
 0x22f   :  { %310 = vmatpush.msra.mxu3 %v286_v57 }
 0x232   :  { %v697_v58 = vpop.eup %573 }
 0x233   :  { %v169_v59 = vsel %vm135_vm1, %v697_v58, 0.0 }
 0x234   :  { %170 = vadd.xlane.f32.xlu2 %v169_v59  ;;  %v361_v59 = vld [vmem:[#allocation2 + $0x30] sm:$0xff] }
 0x23d   :  { %555 = vrot.lane.b32.xlu1 %v554_v60, %s621_s0  ;;  %v360_v60 = vld [vmem:[#allocation2 + $0x28] sm:$0xff] }
 0x245   :  { %464 = vrot.lane.b32.xlu1 %v660_v13, %s622_s22 }
 0x24c   :  { %466 = vrot.lane.b32.xlu2 %v657_v12, %s622_s22 }
 0x28f   :  { %v162_v61 = vpop.xlane.xlu0 %161 }
 0x290   :  { %575 = vrcp.f32 %v162_v61  ;;  %v183_v11 = vand.u32 2147483648, %v162_v61  ;;  %vm177_vm3 = vweird.f32 %v162_v61  ;;  %v181_v12 = vand.u32 2147483647, %v162_v61 }
 0x292   :  { %v184_v17 = vor.u32 1.1754944e-38, %v183_v11  ;;  %vm182_vm5 = vcmp.eq.f32.partialorder %v181_v12, 8.507059e+37  ;;  %v623_v11 = vmov 8.0  }
 0x296   :  { %v576_v63 = vpop.eup %575 }
 0x297   :  { %v165_v62 = vpop.xlane.xlu1 %164  ;;  %v173_v0 = vmul.f32 %v576_v63, %v162_v61  ;;  %vm178_vm2 = vweird.f32 %v576_v63  ;;  %v359_v61 = vld [vmem:[#allocation2 + $0x20] sm:$0xff] }
 0x298   :  { %577 = vrcp.f32 %v165_v62  ;;  %vm179_vm4 = vmor %vm177_vm3, %vm178_vm2  ;;  %v197_v27 = vand.u32 2147483648, %v165_v62  ;;  %vm191_vm7 = vweird.f32 %v165_v62  ;;  %v195_v30 = vand.u32 2147483647, %v165_v62 }
 0x299   :  { %v174_v2 = vsub.f32 1.0, %v173_v0 }
 0x29a   :  { %v198_v34 = vor.u32 1.1754944e-38, %v197_v27  ;;  %vm196_vm9 = vcmp.eq.f32.partialorder %v195_v30, 8.507059e+37 }
 0x29b   :  { %v175_v5 = vmul.f32 %v576_v63, %v174_v2 }
 0x29d   :  { %v176_v7 = vadd.f32 %v576_v63, %v175_v5 }
 0x29e   :  { %v578_v3 = vpop.eup %577 }
 0x29f   :  { %v168_v1 = vpop.xlane.xlu2 %167  ;;  %v187_v6 = vmul.f32 %v578_v3, %v165_v62  ;;  %v180_v16 = vsel %vm179_vm4, %v576_v63, %v176_v7  ;;  %vm192_vm6 = vweird.f32 %v578_v3 }
 0x2a0   :  { %579 = vrcp.f32 %v168_v1  ;;  %v185_v23 = vsel %vm182_vm5, %v184_v17, %v180_v16  ;;  %vm193_vm8 = vmor %vm191_vm7, %vm192_vm6  ;;  %v211_v38 = vand.u32 2147483648, %v168_v1  ;;  %vm205_vm11 = vweird.f32 %v168_v1 }
 0x2a1   :  { %v188_v8 = vsub.f32 1.0, %v187_v6  ;;  %v228_v29 = vmul.f32 %v685_v45, %v185_v23  ;;  %v209_v40 = vand.u32 2147483647, %v168_v1 }
 0x2a2   :  { %v212_v43 = vor.u32 1.1754944e-38, %v211_v38  ;;  %v403_v38 = vld [vmem:[#allocation2 + $0xb0] sm:$0xff] }
 0x2a3   :  { %v189_v13 = vmul.f32 %v578_v3, %v188_v8  ;;  %vm210_vm13 = vcmp.eq.f32.partialorder %v209_v40, 8.507059e+37  ;;  %v402_v40 = vld [vmem:[#allocation2 + $0xa8] sm:$0xff] }
 0x2a5   :  { %v190_v25 = vadd.f32 %v578_v3, %v189_v13 }
 0x2a6   :  { %v580_v10 = vpop.eup %579 }
 0x2a7   :  { %v171_v9 = vpop.xlane.xlu2 %170  ;;  %v201_v14 = vmul.f32 %v580_v10, %v168_v1  ;;  %v194_v33 = vsel %vm193_vm8, %v578_v3, %v190_v25  ;;  %vm206_vm10 = vweird.f32 %v580_v10 }
 0x2a8   :  { %581 = vrcp.f32 %v171_v9  ;;  %v199_v35 = vsel %vm196_vm9, %v198_v34, %v194_v33  ;;  %vm207_vm12 = vmor %vm205_vm11, %vm206_vm10  ;;  %v225_v46 = vand.u32 2147483648, %v171_v9  ;;  %vm219_vm15 = vweird.f32 %v171_v9 }
 0x2a9   :  { %v202_v24 = vsub.f32 1.0, %v201_v14  ;;  %v229_v39 = vmul.f32 %v689_v50, %v199_v35  ;;  %v223_v48 = vand.u32 2147483647, %v171_v9  ;;  %583 = vrcp.f32 %v623_v11 }
 0x2aa   :  { %v226_v50 = vor.u32 1.1754944e-38, %v225_v46  ;;  %v398_v46 = vld [vmem:[#allocation2 + $0x88] sm:$0xff] }
 0x2ab   :  { %v203_v31 = vmul.f32 %v580_v10, %v202_v24  ;;  %vm224_vm3 = vcmp.eq.f32.partialorder %v223_v48, 8.507059e+37 }
 0x2ad   :  { %v204_v37 = vadd.f32 %v580_v10, %v203_v31 }
 0x2ae   :  { %v582_v26 = vpop.eup %581 }
 0x2af   :  { %v556_v19 = vpop.permute.xlu1 %555  ;;  %v215_v32 = vmul.f32 %v582_v26, %v171_v9  ;;  %v208_v42 = vsel %vm207_vm12, %v580_v10, %v204_v37  ;;  %vm220_vm14 = vweird.f32 %v582_v26  ;;  %v467_v9 = vpop.permute.xlu2 %466  ;;  %v404_v37 = vld [vmem:[#allocation2 + $0xb8] sm:$0xff]  ;;  %vm517_vm12 = vcmask 122880  }
 0x2b0   :  { %v557_v21 = vunpack.i.l.bf16 %v556_v19  ;;  %v558_v28 = vunpack.i.h.bf16 %v556_v19  ;;  %v213_v44 = vsel %vm210_vm13, %v212_v43, %v208_v42  ;;  %vm221_vm2 = vmor %vm219_vm15, %vm220_vm14  ;;  %v401_v42 = vld [vmem:[#allocation2 + $0xa0] sm:$0xff] }
 0x2b1   :  { %v216_v36 = vsub.f32 1.0, %v215_v32  ;;  %v230_v47 = vmul.f32 %v693_v55, %v213_v44  ;;  %v362_v55 = vld [vmem:[#allocation2 + $0x38] sm:$0xff] }
 0x2b2   :  { %264 = vmatpush.msra.mxu2 %v557_v21  ;;  %380 = vmatpush.msrb.mxu3 %v362_v55  ;;  %v400_v44 = vld [vmem:[#allocation2 + $0x98] sm:$0xff] }
 0x2b3   :  { %v217_v41 = vmul.f32 %v582_v26, %v216_v36  ;;  %v392_v55 = vld [vmem:[#allocation2 + $0x58] sm:$0xff] }
 0x2b4   :  { %265 = vmatpush.msra.mxu2 %v558_v28  ;;  %381 = vmatpush.msrb.mxu3 %v361_v59 }
 0x2b5   :  { %533 = vmatmul.msk.f32.vlgmr.msra.gmra.mxu2 %vm135_vm1, %v228_v29  ;;  %v218_v45 = vadd.f32 %v582_v26, %v217_v41 }
 0x2b6   :  { %382 = vmatpush.msrb.mxu3 %v360_v60  ;;  %407 = vmatpush.msrb.mxu2 %v404_v37  ;;  %v561_v60 = vld [vmem:[#allocation2 + $0x123] ss:$0 sm:$0xff] }
 0x2b7   :  { %v222_v49 = vsel %vm221_vm2, %v582_v26, %v218_v45  ;;  %v465_v10 = vpop.permute.xlu1 %464  ;;  %v399_v45 = vld [vmem:[#allocation2 + $0x90] sm:$0xff] }
 0x2b8   :  { %v227_v51 = vsel %vm224_vm3, %v226_v50, %v222_v49  ;;  %383 = vmatpush.msrb.mxu3 %v359_v61  ;;  %408 = vmatpush.msrb.mxu2 %v403_v38  ;;  %v396_v49 = vld [vmem:[#allocation2 + $0x78] sm:$0xff]  ;;  %v391_v61 = vld [vmem:[#allocation2 + $0x50] sm:$0xff]  ;;  %v565_v38 = vld [vmem:[#allocation2 + $0x125] ss:$0 sm:$0xff] }
 0x2b9   :  { %v231_v52 = vmul.f32 %v697_v58, %v227_v51  ;;  %v395_v51 = vld [vmem:[#allocation2 + $0x70] sm:$0xff] }
 0x2ba   :  { %409 = vmatpush.msrb.mxu2 %v402_v40 }
 0x2bc   :  { %410 = vmatpush.msrb.mxu2 %v401_v42 }
 0x2bd   :  { %534 = vmatmul.msk.f32.gmra.mxu2 %vm135_vm1, %v229_v39 }
 0x2be   :  { %411 = vmatpush.msrb.mxu2 %v400_v44 }
 0x2c0   :  { %412 = vmatpush.msrb.mxu2 %v399_v45  ;;  %v497_v45 = vld [vmem:[#allocation2 + $0x128] sm:$0xff] }
 0x2c2   :  { %413 = vmatpush.msrb.mxu2 %v398_v46 }
 0x2c5   :  { %535 = vmatmul.msk.f32.gmra.mxu2 %vm135_vm1, %v230_v47  ;;  %v397_v47 = vld [vmem:[#allocation2 + $0x80] sm:$0xff] }
 0x2c6   :  { %414 = vmatpush.msrb.mxu2 %v397_v47 }
 0x2c8   :  { %415 = vmatpush.msrb.mxu2 %v396_v49 }
 0x2ca   :  { %416 = vmatpush.msrb.mxu2 %v395_v51 }
 0x2cc   :  { %417 = vmatpush.msrb.mxu2 %v394_v53 }
 0x2cd   :  { %536 = vmatmul.msk.f32.gmra.mxu2 %vm135_vm1, %v231_v52 }
 0x2ce   :  { %418 = vmatpush.msrb.mxu2 %v393_v56  ;;  %v506_v56 = vld [vmem:[#allocation2 + $0x130] sm:$0xff] }
 0x2d0   :  { %419 = vmatpush.msrb.mxu2 %v392_v55 }
 0x2d2   :  { %420 = vmatpush.msrb.mxu2 %v391_v61 }
 0x338   :  { %v267_v62 = vpop.f32.mrf.mxu2 }
 0x339   :  { %v279_v1 = vmul.f32 %v267_v62, %v664_v15  ;;  %v560_v15 = vld [vmem:[#allocation2 + $0x122] ss:$0 sm:$0xff] }
 0x340   :  { %v270_v58 = vpop.f32.mrf.mxu2 }
 0x341   :  { %v280_v0 = vmul.f32 %v270_v58, %v669_v18  ;;  %v584_v18 = vpop.eup %583 }
 0x342   :  { %v324_v12 = vmul.f32 8.0, %v584_v18  ;;  %vm328_vm4 = vweird.f32 %v584_v18 }
 0x343   :  { %v283_v3 = vadd.f32 %v280_v0, %v279_v1 }
 0x344   :  { %v325_v16 = vsub.f32 1.0, %v324_v12 }
 0x346   :  { %v326_v19 = vmul.f32 %v584_v18, %v325_v16 }
 0x348   :  { %v273_v63 = vpop.f32.mrf.mxu2  ;;  %v327_v24 = vadd.f32 %v584_v18, %v326_v19 }
 0x349   :  { %v281_v2 = vmul.f32 %v273_v63, %v673_v20  ;;  %v562_v63 = vld [vmem:[#allocation2 + $0x124] ss:$0 sm:$0xff] }
 0x34a   :  { %v722_v27 = vsel %vm328_vm4, %v584_v18, %v327_v24 }
 0x34b   :  { %v284_v6 = vadd.f32 %v283_v3, %v281_v2  ;;  %v390_v2 = vld [vmem:[#allocation2 + $0x48] sm:$0xff]  ;;  %v389_v3 = vld [vmem:[#allocation2 + $0x40] sm:$0xff] }
 0x34c   :  { %421 = vmatpush.msrb.mxu2 %v390_v2 }
 0x34e   :  { %422 = vmatpush.msrb.mxu2 %v389_v3 }
 0x350   :  { %v276_v5 = vpop.f32.mrf.mxu2 }
 0x351   :  { %v282_v7 = vmul.f32 %v276_v5, %v677_v22  ;;  %v563_v5 = vld [vmem:[#allocation2 + $0x121] ss:$0 sm:$0xff] }
 0x353   :  { %v285_v8 = vadd.f32 %v284_v6, %v282_v7 }
 0x355   :  { %537 = vmatmul.msk.f32.vlgmr.msra.gmra.mxu3 %vm36_vm0, %v285_v8 }
 0x356   :  { %539 = vmatpush.xpose.msk.msra.mxu3 %vm36_vm0, %v467_v9  ;;  %v564_v9 = vld [vmem:[#allocation2 + $0x127] ss:$0 sm:$0xff] }
 0x35a   :  { %540 = vmatpush.xpose.msk.msra.mxu3 %vm36_vm0, %v465_v10 }
 0x3d8   :  { %v312_v20 = vpop.f32.mrf.mxu3 }
 0x3d9   :  { %v313_v13 = vadd.f32 %v560_v15, %v312_v20 }
 0x3db   :  { %v315_v14 = vadd.f32 %v313_v13, %v645_v4 }
 0x3dd   :  { %v316_v22 = vsel %vm36_vm0, %v315_v14, 0.0 }
 0x3de   :  { %v317_v17 = vrot.slane %v316_v22, 4 }
 0x3e0   :  { %v318_v21 = vadd.f32 %v317_v17, %v316_v22 }
 0x3e2   :  { %v319_v23 = vrot.slane %v318_v21, 2 }
 0x3e4   :  { %v320_v25 = vadd.f32 %v319_v23, %v318_v21 }
 0x3e6   :  { %v321_v26 = vrot.slane %v320_v25, 1 }
 0x3e8   :  { %v322_v28 = vadd.f32 %v321_v26, %v320_v25 }
 0x3ea   :  { %v330_v29 = vmul.f32 %v722_v27, %v322_v28 }
 0x3ec   :  { %v331_v30 = vsub.f32 %v315_v14, %v330_v29 }
 0x3ee   :  { %v332_v31 = vmul.f32 %v331_v30, %v331_v30 }
 0x3f0   :  { %v333_v4 = vsel %vm36_vm0, %v332_v31, 0.0 }
 0x3f1   :  { %v334_v32 = vrot.slane %v333_v4, 4 }
 0x3f3   :  { %v335_v33 = vadd.f32 %v334_v32, %v333_v4 }
 0x3f5   :  { %v336_v34 = vrot.slane %v335_v33, 2 }
 0x3f7   :  { %v337_v35 = vadd.f32 %v336_v34, %v335_v33 }
 0x3f9   :  { %v338_v36 = vrot.slane %v337_v35, 1 }
 0x3fb   :  { %v339_v39 = vadd.f32 %v338_v36, %v337_v35 }
 0x3fd   :  { %v340_v41 = vmul.f32 %v339_v39, %v722_v27 }
 0x3ff   :  { %v341_v43 = vadd.f32 1e-05, %v340_v41  ;;  %v566_v41 = vld [vmem:[#allocation2 + $0x126] ss:$0 sm:$0xff] }
 0x401   :  { %585 = vrsqrt.f32 %v341_v43  ;;  %vm348_vm6 = vweird.f32 %v341_v43 }
 0x407   :  { %v586_v48 = vpop.eup %585 }
 0x408   :  { %v343_v50 = vmul.f32 %v586_v48, %v341_v43  ;;  %vm349_vm5 = vweird.f32 %v586_v48 }
 0x409   :  { %vm350_vm7 = vmor %vm348_vm6, %vm349_vm5 }
 0x40a   :  { %v344_v52 = vmul.f32 %v586_v48, %v343_v50 }
 0x40c   :  { %v345_v54 = vmul.f32 0.5, %v344_v52 }
 0x40e   :  { %v346_v57 = vsub.f32 1.5, %v345_v54 }
 0x410   :  { %v347_v59 = vmul.f32 %v586_v48, %v346_v57 }
 0x412   :  { %v351_v62 = vsel %vm350_vm7, %v586_v48, %v347_v59 }
 0x413   :  { %v352_v58 = vmul.f32 %v351_v62, %v331_v30 }
 0x415   :  { %v355_v0 = vmul.f32 %v561_v60, %v352_v58 }
 0x417   :  { %v358_v1 = vadd.f32 %v562_v63, %v355_v0 }
 0x419   :  { %538 = vmatmul.msk.f32.vlgmr.msrb.gmra.mxu3 %vm36_vm0, %v358_v1 }
 0x49c   :  { %v385_v6 = vpop.f32.mrf.mxu3 }
 0x49d   :  { %v386_v7 = vadd.f32 %v563_v5, %v385_v6 }
 0x49f   :  { %v388_v8 = vmax.f32 %v386_v7, 0.0 }
 0x4a1   :  { %423 = vmatmul.f32.vlgmr.msrb.gmra.mxu2 %v388_v8 }
 0x524   :  { %v424_v10 = vpop.f32.mrf.mxu2 }
 0x525   :  { %v425_v11 = vadd.f32 %v564_v9, %v424_v10 }
 0x527   :  { %v427_v18 = vadd.f32 %v425_v11, %v358_v1 }
 0x529   :  { %v428_v15 = vsel %vm36_vm0, %v427_v18, 0.0 }
 0x52a   :  { %v429_v12 = vrot.slane %v428_v15, 4 }
 0x52c   :  { %v430_v20 = vadd.f32 %v429_v12, %v428_v15 }
 0x52e   :  { %v431_v13 = vrot.slane %v430_v20, 2 }
 0x530   :  { %v432_v14 = vadd.f32 %v431_v13, %v430_v20 }
 0x532   :  { %v433_v16 = vrot.slane %v432_v14, 1 }
 0x534   :  { %v434_v22 = vadd.f32 %v433_v16, %v432_v14 }
 0x536   :  { %v435_v17 = vmul.f32 %v434_v22, %v722_v27 }
 0x538   :  { %v436_v19 = vsub.f32 %v427_v18, %v435_v17 }
 0x53a   :  { %v437_v21 = vmul.f32 %v436_v19, %v436_v19 }
 0x53c   :  { %v438_v23 = vsel %vm36_vm0, %v437_v21, 0.0 }
 0x53d   :  { %v439_v24 = vrot.slane %v438_v23, 4 }
 0x53f   :  { %v440_v25 = vadd.f32 %v439_v24, %v438_v23 }
 0x541   :  { %v441_v26 = vrot.slane %v440_v25, 2 }
 0x543   :  { %v442_v28 = vadd.f32 %v441_v26, %v440_v25 }
 0x545   :  { %v443_v29 = vrot.slane %v442_v28, 1 }
 0x547   :  { %v444_v30 = vadd.f32 %v443_v29, %v442_v28 }
 0x549   :  { %v445_v31 = vmul.f32 %v444_v30, %v722_v27 }
 0x54b   :  { %v446_v4 = vadd.f32 1e-05, %v445_v31 }
 0x54d   :  { %587 = vrsqrt.f32 %v446_v4  ;;  %vm453_vm9 = vweird.f32 %v446_v4 }
 0x553   :  { %v588_v32 = vpop.eup %587 }
 0x554   :  { %v448_v33 = vmul.f32 %v588_v32, %v446_v4  ;;  %vm454_vm8 = vweird.f32 %v588_v32 }
 0x555   :  { %vm455_vm10 = vmor %vm453_vm9, %vm454_vm8 }
 0x556   :  { %v449_v34 = vmul.f32 %v588_v32, %v448_v33 }
 0x558   :  { %v450_v35 = vmul.f32 0.5, %v449_v34 }
 0x55a   :  { %v451_v36 = vsub.f32 1.5, %v450_v35 }
 0x55c   :  { %v452_v37 = vmul.f32 %v588_v32, %v451_v36 }
 0x55e   :  { %v456_v39 = vsel %vm455_vm10, %v588_v32, %v452_v37 }
 0x55f   :  { %v457_v40 = vmul.f32 %v456_v39, %v436_v19 }
 0x561   :  { %v460_v42 = vmul.f32 %v565_v38, %v457_v40 }
 0x563   :  { %v463_v43 = vadd.f32 %v566_v41, %v460_v42 }
 0x565   :  { %541 = vmatmul.msk.f32.vlgmr.msra.gmra.mxu3 %vm36_vm0, %v463_v43 }
 0x5e8   :  { %v492_v27 = vpop.f32.mrf.mxu3 }
 0x5e9   :  { %589 = vtanh.f32 %v492_v27 }
 0x5ef   :  { %v590_v44 = vpop.eup %589 }
 0x5f0   :  { %v496_v46 = vmul.f32 10.0, %v590_v44 }
 0x5f2   :  { %v498_v47 = vadd.f32 %v497_v45, %v496_v46 }
 0x5f4   :  { %v499_v48 = vsel %vm135_vm1, %v498_v47, -inf }
 0x5f5   :  { %v500_v49 = vrot.slane %v499_v48, 4 }
 0x5f7   :  { %v501_v50 = vmax.f32 %v499_v48, %v500_v49 }
 0x5f9   :  { %v502_v51 = vrot.slane %v501_v50, 2 }
 0x5fb   :  { %v503_v52 = vmax.f32 %v501_v50, %v502_v51 }
 0x5fd   :  { %v504_v53 = vrot.slane %v503_v52, 1 }
 0x5ff   :  { %v505_v54 = vmax.f32 %v503_v52, %v504_v53 }
 0x601   :  { %vm507_vm11 = vcmp.eq.f32.partialorder %v498_v47, %v505_v54 }
 0x602   :  { %v508_v57 = vsel %vm507_vm11, %v506_v56, 4.0 }
 0x603   :  { %v509_v55 = vsel %vm135_vm1, %v508_v57, inf }
 0x604   :  { %v510_v59 = vrot.slane %v509_v55, 4 }
 0x606   :  { %v511_v60 = vmin.f32 %v509_v55, %v510_v59 }
 0x608   :  { %v512_v61 = vrot.slane %v511_v60, 2 }
 0x60a   :  { %v513_v62 = vmin.f32 %v511_v60, %v512_v61 }
 0x60c   :  { %v514_v58 = vrot.slane %v513_v62, 1 }
 0x60e   :  { %v515_v63 = vmin.f32 %v513_v62, %v514_v58 }
 0x610   :  { %vm542_vm0 = vcmp.lt.s32.totalorder %v515_v63, 0  ;;  %v543_v0 = vceil.f32 %v515_v63  ;;  %v544_v1 = vfloor.f32 %v515_v63 }
 0x612   :  { %v545_v2 = vsel %vm542_vm0, %v543_v0, %v544_v1 }
 0x613   :  { %v546_v3 = vcvt.f32.s32 %v545_v2 }
 0x615   :  { %518 = vst.msk [vmem:[%s740_s2] sm:$0x1] %vm517_vm12, %v546_v3 }
 0x616   :  { %523 = vsyncpa [#allocation3], 1 }

</bundles_post_ra>
